<compile_context>
chip_gen: v7x
topology: tpu7x:2x2x1
jax: 0.10.0
libtpu: 0.0.40
codegen_flags: <defaults>
</compile_context>

<pallas_src>
import jax
import jax.numpy as jnp
from jax import lax
from jax.experimental import pallas as pl
from jax.experimental.pallas import tpu as pltpu


def _nlpcnn_kernel(x_ref, wc_ref, bc_ref, wf_ref, bf_ref, mask_ref, out_ref):
    """Fused conv-as-matmul + bias + ReLU + masked max-pool-over-time + FC.

    x_ref:    (TB, L, KE)  bf16  pre-im2col'd embedded tokens (KE = k_max*E)
    wc_ref:   (KE, FP)     bf16  fused conv weight (tap-major row blocks)
    bc_ref:   (1, FP)      f32   fused conv bias
    wf_ref:   (FP, NLP)    bf16  zero-padded FC weight
    bf_ref:   (1, NLP)     f32   zero-padded FC bias
    mask_ref: (L, FP)      f32   1.0 where (time, feature) position is valid
    out_ref:  (TB, NLP)    f32   lane-dense logits slab
    """
    TB, L, KE = x_ref.shape
    FP = wc_ref.shape[1]

    # Leading-dim merge only (lane dim untouched) -> no layout shuffle.
    xm = x_ref[...].reshape(TB * L, KE)

    # One MXU matmul covers every tap of every conv branch (K = k_max*E).
    y = jnp.dot(xm, wc_ref[...], preferred_element_type=jnp.float32)
    y = jnp.maximum(y + bc_ref[...], 0.0)                  # bias + ReLU (f32)

    # Zero out invalid time positions per branch and padded feature columns.
    # Masking to 0 is exact after ReLU (outputs >= 0).
    y = y.reshape(TB, L, FP) * mask_ref[...]
    pooled = jnp.max(y, axis=1)                            # (TB, FP)

    logits = jnp.dot(pooled.astype(wf_ref.dtype), wf_ref[...],
                     preferred_element_type=jnp.float32) + bf_ref[...]
    out_ref[...] = logits.astype(out_ref.dtype)


def _round_up(v, m):
    return ((v + m - 1) // m) * m


def nlp_cnn_forward(x_embed, w0, b0, w1, b1, w2, b2, wfc, bfc):
    """x_embed: (B, L, E) f32. Conv weights wK: (kK, E, FK) tap-major,
    bK: (1, FK); wfc: (F_total, NL); bfc: (1, NL).  Returns logits (B, NL)."""
    B, L, E = x_embed.shape
    conv_ws = (w0, w1, w2)
    conv_bs = (b0, b1, b2)
    k_list = tuple(int(w.shape[0]) for w in conv_ws)
    f_list = tuple(int(w.shape[2]) for w in conv_ws)
    k_max = max(k_list)
    KE = k_max * E
    F_total = sum(f_list)
    NL = int(wfc.shape[1])
    FP = _round_up(F_total, 128)      # lane-dense feature slab
    NLP = _round_up(NL, 128)          # lane-dense logits slab

    # ---- wrapper-side im2col (cheap XLA glue; keeps the kernel shuffle-free)
    x_pad = jnp.pad(x_embed, ((0, 0), (0, k_max - 1), (0, 0)))
    x_im = jnp.concatenate([x_pad[:, j:j + L, :] for j in range(k_max)],
                           axis=2)                       # (B, L, k_max*E)
    x_im = x_im.astype(jnp.bfloat16)

    # ---- fuse all taps of all branches into one (KE, FP) weight + (1, FP) bias
    wc = jnp.zeros((KE, FP), jnp.float32)
    bc = jnp.zeros((1, FP), jnp.float32)
    off = 0
    f_bounds = []
    for w, b, k, f in zip(conv_ws, conv_bs, k_list, f_list):
        for j in range(k):
            wc = wc.at[j * E:(j + 1) * E, off:off + f].set(w[j])
        bc = bc.at[:, off:off + f].set(b.reshape(1, f))
        off += f
        f_bounds.append(off)
    wc = wc.astype(jnp.bfloat16)

    # ---- zero-padded FC weight/bias (padded rows/cols are zero => no effect)
    wf = jnp.zeros((FP, NLP), jnp.float32).at[:F_total, :NL].set(wfc)
    wf = wf.astype(jnp.bfloat16)
    bf = jnp.zeros((1, NLP), jnp.float32).at[:, :NL].set(bfc.reshape(1, NL))

    # ---- precomputed validity mask (L, FP): per-branch valid length L-k+1,
    #      padded feature columns masked out entirely.
    mask = jnp.zeros((L, FP), jnp.float32)
    prev = 0
    for bound, k in zip(f_bounds, k_list):
        col = (jnp.arange(L) < (L - k + 1)).astype(jnp.float32)[:, None]
        mask = mask.at[:, prev:bound].set(jnp.broadcast_to(col, (L, bound - prev)))
        prev = bound

    # ---- batch tiling: single grid step unless each half is sublane-dense
    #      (multiple of 8) AND carries enough matmul rows to amortize the
    #      ~0.35us/step overhead (only pays off on 2-TC v7x / large B).
    if B % 16 == 0 and (B // 2) * L >= 256:
        TB = B // 2
    else:
        TB = B
    grid = (B // TB,)

    cost = pl.CostEstimate(
        flops=int(2 * B * L * KE * FP + 2 * B * FP * NLP),
        transcendentals=0,
        bytes_accessed=int(2 * (x_im.size + wc.size + wf.size)
                           + 4 * (bc.size + bf.size + mask.size + B * NLP)))

    out = pl.pallas_call(
        _nlpcnn_kernel,
        out_shape=jax.ShapeDtypeStruct((B, NLP), jnp.float32),
        grid=grid,
        in_specs=[
            pl.BlockSpec((TB, L, KE), lambda i: (i, 0, 0)),
            pl.BlockSpec((KE, FP), lambda i: (0, 0)),     # grid-invariant
            pl.BlockSpec((1, FP), lambda i: (0, 0)),
            pl.BlockSpec((FP, NLP), lambda i: (0, 0)),
            pl.BlockSpec((1, NLP), lambda i: (0, 0)),
            pl.BlockSpec((L, FP), lambda i: (0, 0)),
        ],
        out_specs=pl.BlockSpec((TB, NLP), lambda i: (i, 0)),
        compiler_params=pltpu.CompilerParams(
            dimension_semantics=("parallel",)),
        cost_estimate=cost,
    )(x_im, wc, bc, wf, bf, mask)

    return out[:, :NL]


def _reference(x_embed, w0, b0, w1, b1, w2, b2, wfc, bfc):
    """Pure-JAX f32 reference mirroring the PyTorch forward (eval mode)."""
    xc = jnp.transpose(x_embed, (0, 2, 1))                 # (B, E, L) like NCL

    def branch(w, b):
        wt = jnp.transpose(w, (2, 1, 0))                   # (F, E, k) = OIW
        y = jax.lax.conv_general_dilated(
            xc, wt, window_strides=(1,), padding="VALID",
            dimension_numbers=("NCH", "OIH", "NCH"))
        y = jax.nn.relu(y + b.reshape(1, -1, 1))
        return jnp.max(y, axis=2)                          # (B, F)

    pooled = jnp.concatenate(
        [branch(w0, b0), branch(w1, b1), branch(w2, b2)], axis=1)
    return pooled @ wfc + bfc


if __name__ == "__main__":
    # Small config consistent with the module's __init__.
    B, L = 2, 16
    vocab_size, embed_dim = 50, 32
    filter_window_size = (2, 3, 4)
    filter_features_dim = (8, 8, 16)
    num_labels = 4
    pad_token_id = 0

    key = jax.random.PRNGKey(0)
    keys = jax.random.split(key, 10)

    # Embedding table (padding_idx row zeroed, max_norm=0.5 renorm applied).
    emb = 0.5 * jax.random.normal(keys[0], (vocab_size, embed_dim), jnp.float32)
    emb = emb.at[pad_token_id].set(0.0)
    norms = jnp.linalg.norm(emb, axis=1, keepdims=True)
    emb = emb * jnp.minimum(1.0, 0.5 / jnp.maximum(norms, 1e-12))

    # Conv weights stored as (k, E, F); biases as (1, F).
    def conv_params(kw, kb, k, f):
        w = 0.1 * jax.random.normal(kw, (k, embed_dim, f), jnp.float32)
        b = 0.1 * jax.random.normal(kb, (1, f), jnp.float32)
        return w, b

    w0, b0 = conv_params(keys[1], keys[2], filter_window_size[0], filter_features_dim[0])
    w1, b1 = conv_params(keys[3], keys[4], filter_window_size[1], filter_features_dim[1])
    w2, b2 = conv_params(keys[5], keys[6], filter_window_size[2], filter_features_dim[2])

    f_total = sum(filter_features_dim)
    wfc = 0.1 * jax.random.normal(keys[7], (f_total, num_labels), jnp.float32)
    bfc = 0.1 * jax.random.normal(keys[8], (1, num_labels), jnp.float32)

    input_ids = jax.random.randint(keys[9], (B, L), 0, vocab_size)

    # Embedding lookup (glue, plain JAX gather).  Dropout is identity (eval).
    x_embed = jnp.take(emb, input_ids, axis=0)             # (B, L, E)

    logits = nlp_cnn_forward(x_embed, w0, b0, w1, b1, w2, b2, wfc, bfc)
    logits = jax.block_until_ready(logits)

    ref = _reference(x_embed, w0, b0, w1, b1, w2, b2, wfc, bfc)
    assert logits.shape == (B, num_labels)
    # bf16 matmul operands with f32 accumulation -> relaxed tolerance vs f32 ref.
    assert jnp.allclose(logits, ref, rtol=2e-2, atol=2e-2)

    # TODO(synk): CrossEntropyLoss branch (labels is not None) not implemented
    # in-kernel; forward here corresponds to labels=None (logits only).
    print("KERNEL_OK")
</pallas_src>

<mosaic_0001>
module attributes {stable_mosaic.version = 11 : i64} {
  func.func @_nlpcnn_kernel(%arg0: i32, %arg1: memref<2x16x128xbf16, #tpu.memory_space<vmem>>, %arg2: memref<128x128xbf16, #tpu.memory_space<vmem>>, %arg3: memref<1x128xf32, #tpu.memory_space<vmem>>, %arg4: memref<128x128xbf16, #tpu.memory_space<vmem>>, %arg5: memref<1x128xf32, #tpu.memory_space<vmem>>, %arg6: memref<16x128xf32, #tpu.memory_space<vmem>>, %arg7: memref<2x128xf32, #tpu.memory_space<vmem>>) attributes {dimension_semantics = [#tpu.dimension_semantics<parallel>], iteration_bounds = array<i64: 1>, scalar_prefetch = 0 : i64, scratch_operands = 0 : i64, tpu.core_type = #tpu.core_type<tc>, window_params = [{transform_indices = @transform_0, window_bounds = array<i64: 2, 16, 128>}, {pipeline_mode = #tpu.pipeline_mode<synchronous>, transform_indices = @transform_1, window_bounds = array<i64: 128, 128>}, {pipeline_mode = #tpu.pipeline_mode<synchronous>, transform_indices = @transform_2, window_bounds = array<i64: 1, 128>}, {pipeline_mode = #tpu.pipeline_mode<synchronous>, transform_indices = @transform_3, window_bounds = array<i64: 128, 128>}, {pipeline_mode = #tpu.pipeline_mode<synchronous>, transform_indices = @transform_4, window_bounds = array<i64: 1, 128>}, {pipeline_mode = #tpu.pipeline_mode<synchronous>, transform_indices = @transform_5, window_bounds = array<i64: 16, 128>}, {transform_indices = @transform_6, window_bounds = array<i64: 2, 128>}]} {
    %c0 = arith.constant 0 : index
    %c0_0 = arith.constant 0 : index
    %c0_1 = arith.constant 0 : index
    %0 = vector.load %arg1[%c0, %c0_0, %c0_1] : memref<2x16x128xbf16, #tpu.memory_space<vmem>>, vector<2x16x128xbf16>
    %1 = vector.shape_cast %0 : vector<2x16x128xbf16> to vector<32x128xbf16>
    %c0_2 = arith.constant 0 : index
    %c0_3 = arith.constant 0 : index
    %2 = vector.load %arg2[%c0_2, %c0_3] : memref<128x128xbf16, #tpu.memory_space<vmem>>, vector<128x128xbf16>
    %cst = arith.constant dense<0.000000e+00> : vector<32x128xf32>
    %3 = tpu.matmul %1, %2, %cst {dimension_numbers = #tpu.dot_dimension_numbers<[1], [0], [0], [1], [0, 0, 1, 1], [], []>} : vector<32x128xbf16>, vector<128x128xbf16>, vector<32x128xf32> -> vector<32x128xf32>
    %c0_4 = arith.constant 0 : index
    %c0_5 = arith.constant 0 : index
    %4 = vector.load %arg3[%c0_4, %c0_5] : memref<1x128xf32, #tpu.memory_space<vmem>>, vector<1x128xf32>
    %5 = vector.broadcast %4 : vector<1x128xf32> to vector<32x128xf32>
    %6 = arith.addf %3, %5 : vector<32x128xf32>
    %cst_6 = arith.constant 0.000000e+00 : f32
    %7 = vector.broadcast %cst_6 : f32 to vector<32x128xf32>
    %8 = arith.maximumf %6, %7 : vector<32x128xf32>
    %9 = vector.shape_cast %8 : vector<32x128xf32> to vector<2x16x128xf32>
    %c0_7 = arith.constant 0 : index
    %c0_8 = arith.constant 0 : index
    %10 = vector.load %arg6[%c0_7, %c0_8] : memref<16x128xf32, #tpu.memory_space<vmem>>, vector<16x128xf32>
    %11 = vector.shape_cast %10 : vector<16x128xf32> to vector<1x16x128xf32>
    %12 = vector.broadcast %11 : vector<1x16x128xf32> to vector<2x16x128xf32>
    %13 = arith.mulf %9, %12 : vector<2x16x128xf32>
    %cst_9 = arith.constant dense<0xFF800000> : vector<2x128xf32>
    %14 = vector.multi_reduction <maximumf>, %13, %cst_9 [1] : vector<2x16x128xf32> to vector<2x128xf32>
    %15 = arith.truncf %14 : vector<2x128xf32> to vector<2x128xbf16>
    %c0_10 = arith.constant 0 : index
    %c0_11 = arith.constant 0 : index
    %16 = vector.load %arg4[%c0_10, %c0_11] : memref<128x128xbf16, #tpu.memory_space<vmem>>, vector<128x128xbf16>
    %cst_12 = arith.constant dense<0.000000e+00> : vector<2x128xf32>
    %17 = tpu.matmul %15, %16, %cst_12 {dimension_numbers = #tpu.dot_dimension_numbers<[1], [0], [0], [1], [0, 0, 1, 1], [], []>} : vector<2x128xbf16>, vector<128x128xbf16>, vector<2x128xf32> -> vector<2x128xf32>
    %c0_13 = arith.constant 0 : index
    %c0_14 = arith.constant 0 : index
    %18 = vector.load %arg5[%c0_13, %c0_14] : memref<1x128xf32, #tpu.memory_space<vmem>>, vector<1x128xf32>
    %19 = vector.broadcast %18 : vector<1x128xf32> to vector<2x128xf32>
    %20 = arith.addf %17, %19 : vector<2x128xf32>
    %c0_15 = arith.constant 0 : index
    %c0_16 = arith.constant 0 : index
    %21 = vector.load %arg7[%c0_15, %c0_16] : memref<2x128xf32, #tpu.memory_space<vmem>>, vector<2x128xf32>
    tpu.vector_store %arg7[%c0_15, %c0_16], %20 {strides = array<i32>} : memref<2x128xf32, #tpu.memory_space<vmem>>, vector<2x128xf32>,
    return
  }
  func.func @transform_0(%arg0: i32) -> (i32, i32, i32) {
    %c0_i32 = arith.constant 0 : i32
    %c0_i32_0 = arith.constant 0 : i32
    %c0_i32_1 = arith.constant 0 : i32
    return %arg0, %c0_i32, %c0_i32_0 : i32, i32, i32
  }
  func.func @transform_1(%arg0: i32) -> (i32, i32) {
    %c0_i32 = arith.constant 0 : i32
    %c0_i32_0 = arith.constant 0 : i32
    %c0_i32_1 = arith.constant 0 : i32
    return %c0_i32, %c0_i32_0 : i32, i32
  }
  func.func @transform_2(%arg0: i32) -> (i32, i32) {
    %c0_i32 = arith.constant 0 : i32
    %c0_i32_0 = arith.constant 0 : i32
    %c0_i32_1 = arith.constant 0 : i32
    return %c0_i32, %c0_i32_0 : i32, i32
  }
  func.func @transform_3(%arg0: i32) -> (i32, i32) {
    %c0_i32 = arith.constant 0 : i32
    %c0_i32_0 = arith.constant 0 : i32
    %c0_i32_1 = arith.constant 0 : i32
    return %c0_i32, %c0_i32_0 : i32, i32
  }
  func.func @transform_4(%arg0: i32) -> (i32, i32) {
    %c0_i32 = arith.constant 0 : i32
    %c0_i32_0 = arith.constant 0 : i32
    %c0_i32_1 = arith.constant 0 : i32
    return %c0_i32, %c0_i32_0 : i32, i32
  }
  func.func @transform_5(%arg0: i32) -> (i32, i32) {
    %c0_i32 = arith.constant 0 : i32
    %c0_i32_0 = arith.constant 0 : i32
    %c0_i32_1 = arith.constant 0 : i32
    return %c0_i32, %c0_i32_0 : i32, i32
  }
  func.func @transform_6(%arg0: i32) -> (i32, i32) {
    %c0_i32 = arith.constant 0 : i32
    %c0_i32_0 = arith.constant 0 : i32
    return %arg0, %c0_i32 : i32, i32
  }
}

</mosaic_0001>

<bundles_post_ra>
// kernel: tpu_custom_call.1
= control target key start
LH: loop header
LB: loop body
LE: loop exit
PB: predicated region body
PF: predicated region fallthrough
CT: control target
= control target key end

     0   :  { %11 = vsyncpa [#allocation3], 0  ;;  %s682_s0 = inlined_call_operand.hbm [shape: bf16[2,16,128], index: 0, kind: input, shape index: {}]   ;;  %s683_s1 = inlined_call_operand.hbm [shape: bf16[128,128], index: 1, kind: input, shape index: {}]   ;;  %s684_s2 = inlined_call_operand.vmem [shape: f32[1,128], index: 2, kind: input, shape index: {}]   ;;  %s685_s3 = inlined_call_operand.hbm [shape: bf16[128,128], index: 3, kind: input, shape index: {}]   ;;  %s686_s4 = inlined_call_operand.vmem [shape: f32[1,128], index: 4, kind: input, shape index: {}]   ;;  %s687_s5 = inlined_call_operand.vmem [shape: f32[16,128], index: 5, kind: input, shape index: {}]   ;;  %s688_s6 = inlined_call_operand.hbm [shape: f32[2,128], index: 6, kind: output, shape index: {}]  }
   0x1   :  { %12 = vsyncpa [#allocation6], 0 }
   0x2   :  { %13 = vsyncpa [#allocation4], 0  ;;  %s563_s21 = smov [#allocation5]   ;;  %s564_s23 = smov [#allocation2]  }
   0x3   :  { %s31_s22 = sshll.u32 %s563_s21, 4  ;;  %s19_s24 = sshll.u32 %s564_s23, 4  ;;  %s32_s22 = int_to_ptr.vmem [resolvable:$true] %s31_s22  ;;  %s606_s24 = int_to_ptr.vmem [resolvable:$true] %s19_s24 }
   0x4   :  { %s469_s27 = scalar_lea.hbm %s683_s1, 1024 }
   0x5   :  { %p470_p0 = scmp.ne.s32.totalorder %s683_s1, %s469_s27  ;;  %p473_p1 = scmp.lt.u32.totalorder %s469_s27, %s683_s1 }
   0x7   :  { %p475_p2 = pnand %p473_p1, %p470_p0 }
   0x9   :  { %478 = shalt.err (!%p475_p2)
}
   0xa   :  { %s479_s8 = scalar_lea.vmem %s32_s22, 1024  ;;  %p484_p4 = scmp.lt.s32.totalorder %s32_s22, %s32_s22 }
   0xb   :  { %p480_p3 = scmp.ne.s32.totalorder %s32_s22, %s479_s8  ;;  %p485_p5 = scmp.lt.s32.totalorder %s479_s8, %s479_s8 }
   0xd   :  { %p486_p6 = por %p485_p5, %p484_p4 }
   0xf   :  { %p487_p7 = pnand %p486_p6, %p480_p3 }
  0x11   :  { %490 = shalt.err (!%p487_p7)
}
  0x12   :  { %s565_s9 = smov 64   ;;  %s566_s10 = smov 4  }
  0x13   :  { %37 = dma.hbm_to_vmem [thread:$0]  %s683_s1, 1024, %s32_s22, [#allocation6], %s565_s9, %s565_s9, %s566_s10  }
  0x14   :  { %s491_s15 = scalar_lea.hbm %s682_s0, 256 }
  0x15   :  { %p492_p8 = scmp.ne.s32.totalorder %s682_s0, %s491_s15  ;;  %p495_p9 = scmp.lt.u32.totalorder %s491_s15, %s682_s0 }
  0x17   :  { %p497_p10 = pnand %p495_p9, %p492_p8 }
  0x19   :  { %500 = shalt.err (!%p497_p10)
}
  0x1a   :  { %s501_s20 = scalar_lea.vmem %s606_s24, 256  ;;  %p506_p12 = scmp.lt.s32.totalorder %s606_s24, %s606_s24 }
  0x1b   :  { %p502_p11 = scmp.ne.s32.totalorder %s606_s24, %s501_s20  ;;  %p507_p13 = scmp.lt.s32.totalorder %s501_s20, %s501_s20 }
  0x1d   :  { %p508_p0 = por %p507_p13, %p506_p12 }
  0x1f   :  { %p509_p1 = pnand %p508_p0, %p502_p11 }
  0x21   :  { %512 = shalt.err (!%p509_p1)
}
  0x22   :  { %25 = dma.hbm_to_vmem [thread:$0]  %s682_s0, 256, %s606_s24, [#allocation3], %s565_s9, %s565_s9, %s566_s10  }
  0x23   :  { %s567_s22 = smov [#allocation7]   ;;  %s513_s27 = scalar_lea.hbm %s685_s3, 1024 }
  0x24   :  { %s45_s23 = sshll.u32 %s567_s22, 4  ;;  %p514_p2 = scmp.ne.s32.totalorder %s685_s3, %s513_s27  ;;  %s46_s23 = int_to_ptr.vmem [resolvable:$true] %s45_s23 }
  0x25   :  { %p517_p3 = scmp.lt.u32.totalorder %s513_s27, %s685_s3 }
  0x27   :  { %p519_p4 = pnand %p517_p3, %p514_p2 }
  0x29   :  { %522 = shalt.err (!%p519_p4)
}
  0x2a   :  { %s523_s8 = scalar_lea.vmem %s46_s23, 1024  ;;  %p528_p6 = scmp.lt.s32.totalorder %s46_s23, %s46_s23 }
  0x2b   :  { %p524_p5 = scmp.ne.s32.totalorder %s46_s23, %s523_s8  ;;  %p529_p7 = scmp.lt.s32.totalorder %s523_s8, %s523_s8 }
  0x2d   :  { %p530_p8 = por %p529_p7, %p528_p6 }
  0x2f   :  { %p531_p9 = pnand %p530_p8, %p524_p5 }
  0x31   :  { %534 = shalt.err (!%p531_p9)
}
  0x32   :  { %51 = dma.hbm_to_vmem [thread:$0]  %s685_s3, 1024, %s46_s23, [#allocation6], %s565_s9, %s565_s9, %s566_s10  }
  0x33   :  { %557 = dma.done.wait [#allocation3], 256  }
  0x34   :  { %558 = vsyncadd [#allocation3], 4294967040 }
  0x35   :  { %559 = dma.done.wait [#allocation6], 2048  }
  0x36   :  { %560 = vsyncadd [#allocation6], 4294965248  ;;  %v568_v0 = vmov 0.0   ;;  %v451_v1 = vld [vmem:[#allocation5] sm:$0xff]   ;;  %v452_v2 = vld [vmem:[#allocation5 + $0x8] sm:$0xff]   ;;  %vm569_vm0 = vmmov 0  }
  0x37   :  { %423 = vmatprep.subr.bf16.mxu1 %v568_v0  ;;  %403 = vmatprep.subr.bf16.mxu0 %v451_v1  ;;  %v453_v3 = vld [vmem:[#allocation5 + $0x10] sm:$0xff]   ;;  %v454_v4 = vld [vmem:[#allocation5 + $0x18] sm:$0xff]   ;;  %v455_v6 = vld [vmem:[#allocation5 + $0x20] sm:$0xff]   ;;  %vm255_vm1 = vcmask 1041409   ;;  %s570_s14 = smov [#allocation8]  }
  0x38   :  { %404 = vmatpush3.bf16.msra.mxu0 %v451_v1  ;;  %v459_v5 = vld [vmem:[#allocation2] sm:$0xff]   ;;  %v456_v7 = vld [vmem:[#allocation5 + $0x28] sm:$0xff]   ;;  %v458_v9 = vld [vmem:[#allocation5 + $0x38] sm:$0xff]   ;;  %439 = vmatprep.mubr.msk.bf16.mxu1 %vm569_vm0, %v568_v0  ;;  %s354_s15 = sshll.u32 %s570_s14, 4  ;;  %s355_s15 = int_to_ptr.vmem [resolvable:$true] %s354_s15 }
  0x39   :  { %405 = vmatprep.subr.bf16.mxu0 %v452_v2  ;;  %419 = vmatprep.mubr.bf16.mxu0 %v459_v5  ;;  %v457_v8 = vld [vmem:[#allocation5 + $0x30] sm:$0xff]   ;;  %v460_v10 = vld [vmem:[#allocation2 + $0x8] sm:$0xff]   ;;  %v461_v11 = vld [vmem:[#allocation7] sm:$0xff]   ;;  %s535_s16 = scalar_lea.vmem %s355_s15, 32  ;;  %p540_p11 = scmp.lt.s32.totalorder %s355_s15, %s355_s15 }
  0x3a   :  { %424 = vmatpush3.bf16.msra.mxu1 %v461_v11  ;;  %v462_v12 = vld [vmem:[#allocation7 + $0x8] sm:$0xff]   ;;  %v463_v13 = vld [vmem:[#allocation7 + $0x10] sm:$0xff]   ;;  %v464_v14 = vld [vmem:[#allocation7 + $0x18] sm:$0xff]   ;;  %p536_p10 = scmp.ne.s32.totalorder %s355_s15, %s535_s16  ;;  %p541_p12 = scmp.lt.s32.totalorder %s535_s16, %s535_s16 }
  0x3b   :  { %425 = vmatprep.subr.bf16.mxu1 %v568_v0  ;;  %v465_v15 = vld [vmem:[#allocation7 + $0x20] sm:$0xff]   ;;  %v466_v16 = vld [vmem:[#allocation7 + $0x28] sm:$0xff]   ;;  %v467_v17 = vld [vmem:[#allocation7 + $0x30] sm:$0xff]  }
  0x3c   :  { %406 = vmatpush3.bf16.msra.mxu0 %v452_v2  ;;  %v468_v18 = vld [vmem:[#allocation7 + $0x38] sm:$0xff]   ;;  %v364_v19 = vld [vmem:[%s684_s2] ss:$0 sm:$0xff]  ;;  %p542_p13 = por %p541_p12, %p540_p11 }
  0x3d   :  { %407 = vmatprep.subr.bf16.mxu0 %v453_v3  ;;  %v206_v28 = vld [vmem:[%s687_s5] sm:$0xff]  ;;  %v207_v30 = vld [vmem:[%s687_s5 + $0x8] sm:$0xff] }
  0x3e   :  { %426 = vmatpush3.bf16.msra.mxu1 %v462_v12  ;;  %v375_v58 = vld [vmem:[%s686_s4] ss:$0 sm:$0xff]  ;;  %p543_p0 = pnand %p542_p13, %p536_p10 }
  0x3f   :  { %427 = vmatprep.subr.bf16.mxu1 %v568_v0 }
  0x40   :  { %408 = vmatpush3.bf16.msra.mxu0 %v453_v3 }
  0x41   :  { %409 = vmatprep.subr.bf16.mxu0 %v454_v4 }
  0x42   :  { %428 = vmatpush3.bf16.msra.mxu1 %v463_v13 }
  0x43   :  { %429 = vmatprep.subr.bf16.mxu1 %v568_v0 }
  0x44   :  { %410 = vmatpush3.bf16.msra.mxu0 %v454_v4 }
  0x45   :  { %411 = vmatprep.subr.bf16.mxu0 %v455_v6 }
  0x46   :  { %430 = vmatpush3.bf16.msra.mxu1 %v464_v14 }
  0x47   :  { %431 = vmatprep.subr.bf16.mxu1 %v568_v0 }
  0x48   :  { %412 = vmatpush3.bf16.msra.mxu0 %v455_v6 }
  0x49   :  { %413 = vmatprep.subr.bf16.mxu0 %v456_v7 }
  0x4a   :  { %432 = vmatpush3.bf16.msra.mxu1 %v465_v15 }
  0x4b   :  { %433 = vmatprep.subr.bf16.mxu1 %v568_v0 }
  0x4c   :  { %414 = vmatpush3.bf16.msra.mxu0 %v456_v7 }
  0x4d   :  { %415 = vmatprep.subr.bf16.mxu0 %v457_v8 }
  0x4e   :  { %434 = vmatpush3.bf16.msra.mxu1 %v466_v16 }
  0x4f   :  { %435 = vmatprep.subr.bf16.mxu1 %v568_v0 }
  0x50   :  { %416 = vmatpush3.bf16.msra.mxu0 %v457_v8 }
  0x51   :  { %417 = vmatprep.subr.bf16.mxu0 %v458_v9 }
  0x52   :  { %436 = vmatpush3.bf16.msra.mxu1 %v467_v17 }
  0x53   :  { %437 = vmatprep.subr.bf16.mxu1 %v568_v0 }
  0x54   :  { %418 = vmatpush3.bf16.msra.mxu0 %v458_v9 }
  0x56   :  { %438 = vmatpush3.bf16.msra.mxu1 %v468_v18 }
  0x57   :  { %420 = vmatmul.mubr.bf16.vlgmr.msra.gmra.mrb[0].mxu0 %v460_v10 }
 0x12a   :  { %v421_v20 = vpop.f32.mrb[0].mxu0 }
 0x12b   :  { %v196_v21 = vadd.f32 %v421_v20, %v364_v19  ;;  %v187_v22 = vpop.f32.mrb[1].mxu0 }
 0x12c   :  { %v188_v23 = vadd.f32 %v364_v19, %v187_v22  ;;  %v422_v24 = vpop.f32.mrb[2].mxu0 }
 0x12d   :  { %v204_v25 = vmax.f32 %v196_v21, 0.0  ;;  %v199_v26 = vadd.f32 %v422_v24, %v364_v19  ;;  %v190_v27 = vpop.f32.mrb[3].mxu0 }
 0x12e   :  { %v202_v29 = vmax.f32 %v188_v23, 0.0  ;;  %v191_v31 = vadd.f32 %v364_v19, %v190_v27 }
 0x12f   :  { %v205_v32 = vmax.f32 %v199_v26, 0.0  ;;  %v210_v34 = vmul.f32 %v206_v28, %v204_v25 }
 0x130   :  { %v203_v33 = vmax.f32 %v191_v31, 0.0  ;;  %v208_v36 = vmul.f32 %v206_v28, %v202_v29 }
 0x131   :  { %v211_v35 = vmul.f32 %v207_v30, %v205_v32 }
 0x132   :  { %v209_v37 = vmul.f32 %v207_v30, %v203_v33 }
 0x133   :  { %v219_v38 = vmax.f32 %v210_v34, %v211_v35 }
 0x134   :  { %v212_v39 = vmax.f32 %v208_v36, %v209_v37 }
 0x135   :  { %v220_v40 = vrot.slane %v219_v38, 4 }
 0x136   :  { %v213_v41 = vrot.slane %v212_v39, 4 }
 0x137   :  { %v221_v42 = vmax.f32 %v219_v38, %v220_v40 }
 0x138   :  { %v214_v43 = vmax.f32 %v212_v39, %v213_v41 }
 0x139   :  { %v222_v44 = vrot.slane %v221_v42, 2 }
 0x13a   :  { %v215_v45 = vrot.slane %v214_v43, 2 }
 0x13b   :  { %v223_v46 = vmax.f32 %v221_v42, %v222_v44 }
 0x13c   :  { %v216_v47 = vmax.f32 %v214_v43, %v215_v45 }
 0x13d   :  { %v224_v48 = vrot.slane %v223_v46, 1 }
 0x13e   :  { %v217_v49 = vrot.slane %v216_v47, 1 }
 0x13f   :  { %v225_v50 = vmax.f32 %v223_v46, %v224_v48 }
 0x140   :  { %v218_v51 = vmax.f32 %v216_v47, %v217_v49 }
 0x141   :  { %v227_v52 = vpack.c.bf16 %v225_v50, %v225_v50 }
 0x142   :  { %v226_v53 = vpack.c.bf16 %v218_v51, %v218_v51 }
 0x143   :  { %v254_v54 = vunpack.c.l.b16 %v227_v52 }
 0x144   :  { %v253_v55 = vunpack.c.l.b16 %v226_v53 }
 0x146   :  { %v256_v56 = vsel %vm255_vm1, %v254_v54, %v253_v55 }
 0x147   :  { %v257_v57 = vpack.c.b16 %v256_v56, %v256_v56 }
 0x149   :  { %440 = vmatmul.mubr.bf16.vlgmr.msra.gmra.mrb[0].mxu1 %v257_v57 }
 0x21c   :  { %v341_v59 = vpop.f32.mrb[0].mxu1 }
 0x21d   :  { %v342_v60 = vadd.f32 %v375_v58, %v341_v59  ;;  %v441_v61 = vpop.f32.mrb[1].mxu1 }
 0x21e   :  { %v344_v62 = vpop.f32.mrb[2].mxu1 }
 0x21f   :  { %347 = vst [vmem:[#allocation8] sm:$0x3] %v342_v60  ;;  %v442_v63 = vpop.f32.mrb[3].mxu1 }
 0x220   :  { %546 = shalt.err (!%p543_p0)
}
 0x221   :  { %s547_s4 = scalar_lea.hbm %s688_s6, 32 }
 0x222   :  { %p548_p1 = scmp.ne.s32.totalorder %s688_s6, %s547_s4  ;;  %p551_p2 = scmp.lt.u32.totalorder %s547_s4, %s688_s6 }
 0x224   :  { %p553_p3 = pnand %p551_p2, %p548_p1 }
 0x226   :  { %556 = shalt.err (!%p553_p3)
}
 0x227   :  { %357 = dma.vmem_to_hbm [thread:$0]  %s355_s15, 32, %s688_s6, [#allocation4]  }
 0x228   :  { %561 = dma.done.wait [#allocation4], 32  }
 0x229   :  { %562 = vsyncadd [#allocation4], 4294967264 }
 0x22a   :  { %361 = vsyncpa [#allocation3], 1 }
 0x22b   :  { %362 = vsyncpa [#allocation6], 1 }
 0x22c   :  { %363 = vsyncpa [#allocation4], 1 }

</bundles_post_ra>
